<compile_context>
chip_gen: v6e
topology: v6e:2x2x1
jax: 0.10.0
libtpu: 0.0.40
codegen_flags: <defaults>
</compile_context>

<pallas_src>
import functools

import jax
import jax.numpy as jnp
from jax.experimental import pallas as pl
from jax.experimental.pallas import tpu as pltpu

_LANE = 128
_SUBLANE = 8


def _round_up(x, m):
    return (x + m - 1) // m * m


def _gelu(x, approx):
    # PyTorch nn.GELU() default = exact (erf) GELU. tanh-approx (runs on the EUP slot,
    # free when VALU-bound) is gated behind a flag because it changes numerics ~1e-3 rel.
    if approx:
        return jax.nn.gelu(x, approximate=True)
    return 0.5 * x * (1.0 + jax.lax.erf(x * 0.7071067811865476))
# TODO(synk): only the default 'gelu' activation of MLP.ACTIVATION is implemented; the
# other entries (tanh/relu/...) would plug into _gelu the same way.


def _spec(shape, index_map, buffers=None):
    """BlockSpec helper; buffers=1 disables double-buffering for constant-index weights."""
    if buffers is not None and hasattr(pl, "Buffered"):
        try:
            return pl.BlockSpec(shape, index_map, pipeline_mode=pl.Buffered(buffers))
        except TypeError:  # older BlockSpec signature without pipeline_mode
            pass
    return pl.BlockSpec(shape, index_map)


def _mlp_body(h, get_w, lng_ref, lnb_ref, b_ref, *, layer_num, res, norm, eps,
              hidden_true, gelu_approx):
    """Shared hidden-block loop: [LayerNorm -> Linear -> GELU] (+ residual)."""
    inv_h = jnp.float32(1.0 / hidden_true)
    for l in range(layer_num):
        w_l = get_w(l)
        if norm:
            # Single-pass LN: padded hidden lanes of h are exactly zero, so plain sums
            # divided by the true hidden size are unbiased -> no lane mask / second pass.
            mean = jnp.sum(h, axis=-1, keepdims=True) * inv_h
            ex2 = jnp.sum(h * h, axis=-1, keepdims=True) * inv_h
            var = jnp.maximum(ex2 - mean * mean, 0.0)  # guard mild f32 cancellation
            # gamma/beta are zero-padded -> padded lanes stay exactly 0 after LN.
            hn = (h - mean) * jax.lax.rsqrt(var + eps) * lng_ref[l].astype(jnp.float32) \
                 + lnb_ref[l].astype(jnp.float32)
        else:
            hn = h
        y = jnp.dot(hn.astype(w_l.dtype), w_l, preferred_element_type=jnp.float32)
        y = _gelu(y + b_ref[l].astype(jnp.float32), gelu_approx)
        h = y + h if res else y
    return h


def _mlp_kernel_resident(x_ref, wpre_ref, bpre_ref, lng_ref, lnb_ref,
                         w_ref, b_ref, wpost_ref, bpost_ref, o_ref,
                         *, layer_num, res, norm, eps, hidden_true, gelu_approx):
    # fc_pre: Linear(d_in, hidden) + GELU. Native-dtype MXU matmul, f32 accumulate.
    h = jnp.dot(x_ref[...], wpre_ref[...], preferred_element_type=jnp.float32)
    h = _gelu(h + bpre_ref[...].astype(jnp.float32), gelu_approx)
    h = _mlp_body(h, lambda l: w_ref[l], lng_ref, lnb_ref, b_ref,
                  layer_num=layer_num, res=res, norm=norm, eps=eps,
                  hidden_true=hidden_true, gelu_approx=gelu_approx)
    out = jnp.dot(h.astype(wpost_ref.dtype), wpost_ref[...],
                  preferred_element_type=jnp.float32)
    o_ref[...] = (out + bpost_ref[...].astype(jnp.float32)).astype(o_ref.dtype)


def _mlp_kernel_stream(x_ref, wpre_ref, bpre_ref, lng_ref, lnb_ref,
                       w_hbm, b_ref, wpost_ref, bpost_ref, o_ref,
                       wbuf, sem,
                       *, layer_num, res, norm, eps, hidden_true, gelu_approx):
    # Hidden-layer weights streamed HBM->VMEM with a 2-deep manual double buffer so
    # layer l+1's DMA overlaps layer l's MXU work (used when the whole W_l stack does
    # not fit the VMEM budget, e.g. large hidden on v7x's 64 MiB/TC).
    def w_copy(l, slot):
        return pltpu.make_async_copy(w_hbm.at[l], wbuf.at[slot], sem.at[slot])

    w_copy(0, 0).start()

    h = jnp.dot(x_ref[...], wpre_ref[...], preferred_element_type=jnp.float32)
    h = _gelu(h + bpre_ref[...].astype(jnp.float32), gelu_approx)

    def get_w(l):
        slot = l & 1
        w_copy(l, slot).wait()
        if l + 1 < layer_num:
            w_copy(l + 1, 1 - slot).start()
        return wbuf[slot]

    h = _mlp_body(h, get_w, lng_ref, lnb_ref, b_ref,
                  layer_num=layer_num, res=res, norm=norm, eps=eps,
                  hidden_true=hidden_true, gelu_approx=gelu_approx)

    out = jnp.dot(h.astype(wpost_ref.dtype), wpost_ref[...],
                  preferred_element_type=jnp.float32)
    o_ref[...] = (out + bpost_ref[...].astype(jnp.float32)).astype(o_ref.dtype)


def pad_mlp_params(params):
    """Zero-pad parameters to lane-dense (multiple-of-128) feature axes ONCE.

    Hoisted out of the per-call path so the full weight stack is not re-read/re-written
    in HBM by jnp.pad on every forward call."""
    wpre, bpre, lng, lnb, w, b, wpost, bpost = params
    d_in, hidden = wpre.shape
    d_out = wpost.shape[1]
    layer_num = w.shape[0]

    d_in_p = _round_up(d_in, _LANE)
    h_p = _round_up(hidden, _LANE)
    d_out_p = _round_up(d_out, _LANE)

    pad2 = lambda a, r, c: jnp.pad(a, ((0, r - a.shape[0]), (0, c - a.shape[1])))
    padded = (
        pad2(wpre, d_in_p, h_p),
        pad2(bpre, 1, h_p),
        pad2(lng, layer_num, h_p),   # zero-padded gamma/beta keep padded lanes == 0
        pad2(lnb, layer_num, h_p),
        jnp.pad(w, ((0, 0), (0, h_p - hidden), (0, h_p - hidden))),
        pad2(b, layer_num, h_p),
        pad2(wpost, h_p, d_out_p),
        pad2(bpost, 1, d_out_p),
    )
    dims = dict(d_in=d_in, hidden=hidden, d_out=d_out, layer_num=layer_num,
                d_in_p=d_in_p, h_p=h_p, d_out_p=d_out_p)
    return padded, dims


def mlp_pallas(x, padded_params, dims, *, res=True, norm=True, eps=1e-5,
               row_tile=256, gelu_approx=False):
    """x: (..., input_dim). padded_params/dims from pad_mlp_params. Returns (..., output_dim)."""
    wpre_p, bpre_p, lng_p, lnb_p, w_p, b_p, wpost_p, bpost_p = padded_params
    d_in, hidden, d_out = dims["d_in"], dims["hidden"], dims["d_out"]
    d_in_p, h_p, d_out_p = dims["d_in_p"], dims["h_p"], dims["d_out_p"]
    layer_num = dims["layer_num"]
    assert layer_num >= 1
    assert x.shape[-1] == d_in

    lead = x.shape[:-1]
    xf = x.reshape(-1, d_in)
    n = xf.shape[0]

    itemsize = jnp.dtype(x.dtype).itemsize
    w_itemsize = jnp.dtype(wpre_p.dtype).itemsize

    # ---- row tiling --------------------------------------------------------------
    row_tile = max(_SUBLANE, _round_up(row_tile, _SUBLANE))
    row_tile = min(row_tile, _round_up(n, _SUBLANE))
    # Guarantee >=2 grid steps so dimension_semantics=("parallel",) can shard the row
    # axis across v7x's two TensorCores (negligible ~0.35us/step cost on 1-TC chips).
    if n > _SUBLANE:
        row_tile = min(row_tile, max(_SUBLANE, _round_up(-(-n // 2), _SUBLANE)))

    # ---- VMEM decision tree --------------------------------------------------------
    try:
        vmem_cap = int(pltpu.get_tpu_info().vmem_capacity_bytes)
    except Exception:
        vmem_cap = 64 * 1024 * 1024            # conservative default (v7x per-TC VMEM)
    budget = int(0.85 * vmem_cap)

    w_stack_bytes = w_p.size * w_itemsize
    small_w_bytes = (wpre_p.size + bpre_p.size + lng_p.size + lnb_p.size
                     + b_p.size + wpost_p.size + bpost_p.size) * w_itemsize

    def footprint(rt, resident):
        io = 2 * rt * (d_in_p + d_out_p) * itemsize          # double-buffered x / out tiles
        act = 4 * rt * h_p * 4                               # f32 h/hn/y intermediates + slack
        wt = small_w_bytes + (w_stack_bytes if resident
                              else 2 * h_p * h_p * w_itemsize)  # 2-slot stream buffer
        return wt + io + act + (4 << 20)

    resident = True
    # 1) shrink the row tile before giving up residency (weights stay in VMEM, no reuse
    #    penalty; M=128 still fills the MXU).
    while footprint(row_tile, True) > budget and row_tile > 128:
        row_tile = max(128, _round_up(row_tile // 2, _SUBLANE))
    # 2) if the W_l stack itself is what overflows, stream it layer-by-layer.
    if footprint(row_tile, True) > budget:
        resident = False
        while footprint(row_tile, False) > budget and row_tile > _SUBLANE:
            row_tile = max(_SUBLANE, _round_up(row_tile // 2, _SUBLANE))
    # TODO(synk): if even a single (h_p, h_p) layer weight exceeds the VMEM budget,
    # additionally K-tile the streamed weight inside the layer loop.

    n_pad = _round_up(n, row_tile)
    vmem_needed = footprint(row_tile, resident)
    vmem_limit = int(min(max(vmem_needed, 32 * 1024 * 1024), int(0.92 * vmem_cap)))

    # ---- input (pad only when actually needed) ---------------------------------------
    if n_pad != n or d_in_p != d_in:
        xf = jnp.pad(xf, ((0, n_pad - n), (0, d_in_p - d_in)))

    const = dict(layer_num=layer_num, res=res, norm=norm, eps=eps,
                 hidden_true=hidden, gelu_approx=gelu_approx)

    # Constant-index weights are single-buffered (pl.Buffered(1)): resident parameters
    # cost 1x their size in VMEM instead of the default pipeliner's 2x.
    in_specs = [
        pl.BlockSpec((row_tile, d_in_p), lambda i: (i, 0)),                  # x rows
        _spec((d_in_p, h_p), lambda i: (0, 0), 1),                           # W_pre
        _spec((1, h_p), lambda i: (0, 0), 1),                                # b_pre
        _spec((layer_num, h_p), lambda i: (0, 0), 1),                        # LN gamma
        _spec((layer_num, h_p), lambda i: (0, 0), 1),                        # LN beta
        (_spec((layer_num, h_p, h_p), lambda i: (0, 0, 0), 1) if resident
         else pl.BlockSpec(memory_space=pl.ANY)),                            # W_l stack
        _spec((layer_num, h_p), lambda i: (0, 0), 1),                        # b_l stack
        _spec((h_p, d_out_p), lambda i: (0, 0), 1),                          # W_post
        _spec((1, d_out_p), lambda i: (0, 0), 1),                            # b_post
    ]

    if resident:
        kernel = functools.partial(_mlp_kernel_resident, **const)
        scratch_shapes = []
    else:
        kernel = functools.partial(_mlp_kernel_stream, **const)
        scratch_shapes = [pltpu.VMEM((2, h_p, h_p), wpre_p.dtype),
                          pltpu.SemaphoreType.DMA((2,))]

    flops = 2 * n_pad * (d_in_p * h_p + layer_num * h_p * h_p + h_p * d_out_p)
    transcendentals = n_pad * h_p * (1 + layer_num) + n_pad * layer_num
    bytes_accessed = (xf.size * itemsize + small_w_bytes + w_stack_bytes
                      + n_pad * d_out_p * itemsize)

    out = pl.pallas_call(
        kernel,
        out_shape=jax.ShapeDtypeStruct((n_pad, d_out_p), x.dtype),
        grid_spec=pltpu.PrefetchScalarGridSpec(
            num_scalar_prefetch=0,
            grid=(n_pad // row_tile,),
            in_specs=in_specs,
            out_specs=pl.BlockSpec((row_tile, d_out_p), lambda i: (i, 0)),
            scratch_shapes=scratch_shapes,
        ),
        compiler_params=pltpu.CompilerParams(
            dimension_semantics=("parallel",),      # row axis shards across TCs (v7x)
            vmem_limit_bytes=vmem_limit,
        ),
        cost_estimate=pl.CostEstimate(
            flops=int(flops),
            transcendentals=int(transcendentals),
            bytes_accessed=int(bytes_accessed),
        ),
    )(xf, wpre_p, bpre_p, lng_p, lnb_p, w_p, b_p, wpost_p, bpost_p)

    return out[:n, :d_out].reshape(*lead, d_out)


def mlp_reference(x, params, *, layer_num, res=True, norm=True, eps=1e-5):
    wpre, bpre, lng, lnb, w, b, wpost, bpost = params
    h = jax.nn.gelu(x @ wpre + bpre[0], approximate=False)
    for l in range(layer_num):
        if norm:
            mean = jnp.mean(h, axis=-1, keepdims=True)
            var = jnp.mean(jnp.square(h - mean), axis=-1, keepdims=True)
            hn = (h - mean) * jax.lax.rsqrt(var + eps) * lng[l] + lnb[l]
        else:
            hn = h
        y = jax.nn.gelu(hn @ w[l] + b[l], approximate=False)
        h = y + h if res else y
    return h @ wpost + bpost[0]


def init_params(key, input_dim, hidden_dim, output_dim, layer_num, dtype=jnp.float32):
    ks = jax.random.split(key, 8)
    scale = 0.1
    wpre = jax.random.normal(ks[0], (input_dim, hidden_dim), dtype) * scale
    bpre = jax.random.normal(ks[1], (1, hidden_dim), dtype) * scale
    lng = jnp.ones((layer_num, hidden_dim), dtype)      # LayerNorm weight init (ones)
    lnb = jnp.zeros((layer_num, hidden_dim), dtype)     # LayerNorm bias init (zeros)
    w = jax.random.normal(ks[2], (layer_num, hidden_dim, hidden_dim), dtype) * scale
    b = jax.random.normal(ks[3], (layer_num, hidden_dim), dtype) * scale
    wpost = jax.random.normal(ks[4], (hidden_dim, output_dim), dtype) * scale
    bpost = jax.random.normal(ks[5], (1, output_dim), dtype) * scale
    return (wpre, bpre, lng, lnb, w, b, wpost, bpost)


if __name__ == "__main__":
    # Small config consistent with the module: MLP(input_dim=16, hidden_dim=32,
    # output_dim=8, layer_num=2, act='gelu', res=True, norm=True)
    batch, seq = 2, 8
    input_dim, hidden_dim, output_dim, layer_num = 16, 32, 8, 2

    key = jax.random.PRNGKey(0)
    kx, kp = jax.random.split(key)
    x = jax.random.normal(kx, (batch, seq, input_dim), jnp.float32)
    params = init_params(kp, input_dim, hidden_dim, output_dim, layer_num)

    # Pad parameters ONCE (hoisted out of the per-call path), reuse for every forward.
    padded_params, dims = pad_mlp_params(params)

    out = mlp_pallas(x, padded_params, dims, res=True, norm=True)
    out = jax.block_until_ready(out)

    ref = mlp_reference(x, params, layer_num=layer_num, res=True, norm=True)
    assert out.shape == (batch, seq, output_dim)
    assert jnp.allclose(out, ref, atol=1e-4, rtol=1e-4), "mismatch vs pure-JAX reference"

    print("KERNEL_OK")
</pallas_src>

<mosaic_0001>
module attributes {stable_mosaic.version = 11 : i64} {
  func.func @_mlp_kernel_resident(%arg0: i32, %arg1: memref<8x128xf32, #tpu.memory_space<vmem>>, %arg2: memref<128x128xf32, #tpu.memory_space<vmem>>, %arg3: memref<1x128xf32, #tpu.memory_space<vmem>>, %arg4: memref<2x128xf32, #tpu.memory_space<vmem>>, %arg5: memref<2x128xf32, #tpu.memory_space<vmem>>, %arg6: memref<2x128x128xf32, #tpu.memory_space<vmem>>, %arg7: memref<2x128xf32, #tpu.memory_space<vmem>>, %arg8: memref<128x128xf32, #tpu.memory_space<vmem>>, %arg9: memref<1x128xf32, #tpu.memory_space<vmem>>, %arg10: memref<8x128xf32, #tpu.memory_space<vmem>>) attributes {dimension_semantics = [#tpu.dimension_semantics<parallel>], iteration_bounds = array<i64: 2>, scalar_prefetch = 0 : i64, scratch_operands = 0 : i64, tpu.core_type = #tpu.core_type<tc>, window_params = [{transform_indices = @transform_0, window_bounds = array<i64: 8, 128>}, {pipeline_mode = #tpu.pipeline_mode<synchronous>, transform_indices = @transform_1, window_bounds = array<i64: 128, 128>}, {pipeline_mode = #tpu.pipeline_mode<synchronous>, transform_indices = @transform_2, window_bounds = array<i64: 1, 128>}, {pipeline_mode = #tpu.pipeline_mode<synchronous>, transform_indices = @transform_3, window_bounds = array<i64: 2, 128>}, {pipeline_mode = #tpu.pipeline_mode<synchronous>, transform_indices = @transform_4, window_bounds = array<i64: 2, 128>}, {pipeline_mode = #tpu.pipeline_mode<synchronous>, transform_indices = @transform_5, window_bounds = array<i64: 2, 128, 128>}, {pipeline_mode = #tpu.pipeline_mode<synchronous>, transform_indices = @transform_6, window_bounds = array<i64: 2, 128>}, {pipeline_mode = #tpu.pipeline_mode<synchronous>, transform_indices = @transform_7, window_bounds = array<i64: 128, 128>}, {pipeline_mode = #tpu.pipeline_mode<synchronous>, transform_indices = @transform_8, window_bounds = array<i64: 1, 128>}, {transform_indices = @transform_9, window_bounds = array<i64: 8, 128>}]} {
    %c0 = arith.constant 0 : index
    %c0_0 = arith.constant 0 : index
    %0 = vector.load %arg1[%c0, %c0_0] : memref<8x128xf32, #tpu.memory_space<vmem>>, vector<8x128xf32>
    %c0_1 = arith.constant 0 : index
    %c0_2 = arith.constant 0 : index
    %1 = vector.load %arg2[%c0_1, %c0_2] : memref<128x128xf32, #tpu.memory_space<vmem>>, vector<128x128xf32>
    %cst = arith.constant dense<0.000000e+00> : vector<8x128xf32>
    %2 = tpu.matmul %0, %1, %cst {dimension_numbers = #tpu.dot_dimension_numbers<[1], [0], [0], [1], [0, 0, 1, 1], [], []>} : vector<8x128xf32>, vector<128x128xf32>, vector<8x128xf32> -> vector<8x128xf32>
    %c0_3 = arith.constant 0 : index
    %c0_4 = arith.constant 0 : index
    %3 = vector.load %arg3[%c0_3, %c0_4] : memref<1x128xf32, #tpu.memory_space<vmem>>, vector<1x128xf32>
    %4 = vector.broadcast %3 : vector<1x128xf32> to vector<8x128xf32>
    %5 = arith.addf %2, %4 : vector<8x128xf32>
    %cst_5 = arith.constant 5.000000e-01 : f32
    %6 = vector.broadcast %cst_5 : f32 to vector<8x128xf32>
    %7 = arith.mulf %6, %5 : vector<8x128xf32>
    %cst_6 = arith.constant 0.707106769 : f32
    %8 = vector.broadcast %cst_6 : f32 to vector<8x128xf32>
    %9 = arith.mulf %5, %8 : vector<8x128xf32>
    %10 = math.erf %9 : vector<8x128xf32>
    %cst_7 = arith.constant 1.000000e+00 : f32
    %11 = vector.broadcast %cst_7 : f32 to vector<8x128xf32>
    %12 = arith.addf %11, %10 : vector<8x128xf32>
    %13 = arith.mulf %7, %12 : vector<8x128xf32>
    %c0_8 = arith.constant 0 : index
    %c0_9 = arith.constant 0 : index
    %c0_10 = arith.constant 0 : index
    %14 = vector.load %arg6[%c0_8, %c0_9, %c0_10] : memref<2x128x128xf32, #tpu.memory_space<vmem>>, vector<1x128x128xf32>
    %15 = vector.shape_cast %14 : vector<1x128x128xf32> to vector<128x128xf32>
    %cst_11 = arith.constant dense<0.000000e+00> : vector<8xf32>
    %16 = vector.multi_reduction <add>, %13, %cst_11 [1] : vector<8x128xf32> to vector<8xf32>
    %17 = vector.shape_cast %16 : vector<8xf32> to vector<8x1xf32>
    %cst_12 = arith.constant 3.125000e-02 : f32
    %18 = vector.broadcast %cst_12 : f32 to vector<8x1xf32>
    %19 = arith.mulf %17, %18 : vector<8x1xf32>
    %20 = arith.mulf %13, %13 : vector<8x128xf32>
    %cst_13 = arith.constant dense<0.000000e+00> : vector<8xf32>
    %21 = vector.multi_reduction <add>, %20, %cst_13 [1] : vector<8x128xf32> to vector<8xf32>
    %22 = vector.shape_cast %21 : vector<8xf32> to vector<8x1xf32>
    %cst_14 = arith.constant 3.125000e-02 : f32
    %23 = vector.broadcast %cst_14 : f32 to vector<8x1xf32>
    %24 = arith.mulf %22, %23 : vector<8x1xf32>
    %25 = arith.mulf %19, %19 : vector<8x1xf32>
    %26 = arith.subf %24, %25 : vector<8x1xf32>
    %cst_15 = arith.constant 0.000000e+00 : f32
    %27 = vector.broadcast %cst_15 : f32 to vector<8x1xf32>
    %28 = arith.maximumf %26, %27 : vector<8x1xf32>
    %29 = vector.broadcast %19 : vector<8x1xf32> to vector<8x128xf32>
    %30 = arith.subf %13, %29 : vector<8x128xf32>
    %cst_16 = arith.constant 9.99999974E-6 : f32
    %31 = vector.broadcast %cst_16 : f32 to vector<8x1xf32>
    %32 = arith.addf %28, %31 : vector<8x1xf32>
    %33 = math.rsqrt %32 : vector<8x1xf32>
    %34 = vector.broadcast %33 : vector<8x1xf32> to vector<8x128xf32>
    %35 = arith.mulf %30, %34 : vector<8x128xf32>
    %c0_17 = arith.constant 0 : index
    %c0_18 = arith.constant 0 : index
    %36 = vector.load %arg4[%c0_17, %c0_18] : memref<2x128xf32, #tpu.memory_space<vmem>>, vector<1x128xf32>
    %37 = vector.shape_cast %36 : vector<1x128xf32> to vector<128xf32>
    %38 = vector.shape_cast %37 : vector<128xf32> to vector<1x128xf32>
    %39 = vector.broadcast %38 : vector<1x128xf32> to vector<8x128xf32>
    %40 = arith.mulf %35, %39 : vector<8x128xf32>
    %c0_19 = arith.constant 0 : index
    %c0_20 = arith.constant 0 : index
    %41 = vector.load %arg5[%c0_19, %c0_20] : memref<2x128xf32, #tpu.memory_space<vmem>>, vector<1x128xf32>
    %42 = vector.shape_cast %41 : vector<1x128xf32> to vector<128xf32>
    %43 = vector.shape_cast %42 : vector<128xf32> to vector<1x128xf32>
    %44 = vector.broadcast %43 : vector<1x128xf32> to vector<8x128xf32>
    %45 = arith.addf %40, %44 : vector<8x128xf32>
    %cst_21 = arith.constant dense<0.000000e+00> : vector<8x128xf32>
    %46 = tpu.matmul %45, %15, %cst_21 {dimension_numbers = #tpu.dot_dimension_numbers<[1], [0], [0], [1], [0, 0, 1, 1], [], []>} : vector<8x128xf32>, vector<128x128xf32>, vector<8x128xf32> -> vector<8x128xf32>
    %c0_22 = arith.constant 0 : index
    %c0_23 = arith.constant 0 : index
    %47 = vector.load %arg7[%c0_22, %c0_23] : memref<2x128xf32, #tpu.memory_space<vmem>>, vector<1x128xf32>
    %48 = vector.shape_cast %47 : vector<1x128xf32> to vector<128xf32>
    %49 = vector.shape_cast %48 : vector<128xf32> to vector<1x128xf32>
    %50 = vector.broadcast %49 : vector<1x128xf32> to vector<8x128xf32>
    %51 = arith.addf %46, %50 : vector<8x128xf32>
    %cst_24 = arith.constant 5.000000e-01 : f32
    %52 = vector.broadcast %cst_24 : f32 to vector<8x128xf32>
    %53 = arith.mulf %52, %51 : vector<8x128xf32>
    %cst_25 = arith.constant 0.707106769 : f32
    %54 = vector.broadcast %cst_25 : f32 to vector<8x128xf32>
    %55 = arith.mulf %51, %54 : vector<8x128xf32>
    %56 = math.erf %55 : vector<8x128xf32>
    %cst_26 = arith.constant 1.000000e+00 : f32
    %57 = vector.broadcast %cst_26 : f32 to vector<8x128xf32>
    %58 = arith.addf %57, %56 : vector<8x128xf32>
    %59 = arith.mulf %53, %58 : vector<8x128xf32>
    %60 = arith.addf %59, %13 : vector<8x128xf32>
    %c1 = arith.constant 1 : index
    %c0_27 = arith.constant 0 : index
    %c0_28 = arith.constant 0 : index
    %61 = vector.load %arg6[%c1, %c0_27, %c0_28] : memref<2x128x128xf32, #tpu.memory_space<vmem>>, vector<1x128x128xf32>
    %62 = vector.shape_cast %61 : vector<1x128x128xf32> to vector<128x128xf32>
    %cst_29 = arith.constant dense<0.000000e+00> : vector<8xf32>
    %63 = vector.multi_reduction <add>, %60, %cst_29 [1] : vector<8x128xf32> to vector<8xf32>
    %64 = vector.shape_cast %63 : vector<8xf32> to vector<8x1xf32>
    %cst_30 = arith.constant 3.125000e-02 : f32
    %65 = vector.broadcast %cst_30 : f32 to vector<8x1xf32>
    %66 = arith.mulf %64, %65 : vector<8x1xf32>
    %67 = arith.mulf %60, %60 : vector<8x128xf32>
    %cst_31 = arith.constant dense<0.000000e+00> : vector<8xf32>
    %68 = vector.multi_reduction <add>, %67, %cst_31 [1] : vector<8x128xf32> to vector<8xf32>
    %69 = vector.shape_cast %68 : vector<8xf32> to vector<8x1xf32>
    %cst_32 = arith.constant 3.125000e-02 : f32
    %70 = vector.broadcast %cst_32 : f32 to vector<8x1xf32>
    %71 = arith.mulf %69, %70 : vector<8x1xf32>
    %72 = arith.mulf %66, %66 : vector<8x1xf32>
    %73 = arith.subf %71, %72 : vector<8x1xf32>
    %cst_33 = arith.constant 0.000000e+00 : f32
    %74 = vector.broadcast %cst_33 : f32 to vector<8x1xf32>
    %75 = arith.maximumf %73, %74 : vector<8x1xf32>
    %76 = vector.broadcast %66 : vector<8x1xf32> to vector<8x128xf32>
    %77 = arith.subf %60, %76 : vector<8x128xf32>
    %cst_34 = arith.constant 9.99999974E-6 : f32
    %78 = vector.broadcast %cst_34 : f32 to vector<8x1xf32>
    %79 = arith.addf %75, %78 : vector<8x1xf32>
    %80 = math.rsqrt %79 : vector<8x1xf32>
    %81 = vector.broadcast %80 : vector<8x1xf32> to vector<8x128xf32>
    %82 = arith.mulf %77, %81 : vector<8x128xf32>
    %c1_35 = arith.constant 1 : index
    %c0_36 = arith.constant 0 : index
    %83 = vector.load %arg4[%c1_35, %c0_36] : memref<2x128xf32, #tpu.memory_space<vmem>>, vector<1x128xf32>
    %84 = vector.shape_cast %83 : vector<1x128xf32> to vector<128xf32>
    %85 = vector.shape_cast %84 : vector<128xf32> to vector<1x128xf32>
    %86 = vector.broadcast %85 : vector<1x128xf32> to vector<8x128xf32>
    %87 = arith.mulf %82, %86 : vector<8x128xf32>
    %c1_37 = arith.constant 1 : index
    %c0_38 = arith.constant 0 : index
    %88 = vector.load %arg5[%c1_37, %c0_38] : memref<2x128xf32, #tpu.memory_space<vmem>>, vector<1x128xf32>
    %89 = vector.shape_cast %88 : vector<1x128xf32> to vector<128xf32>
    %90 = vector.shape_cast %89 : vector<128xf32> to vector<1x128xf32>
    %91 = vector.broadcast %90 : vector<1x128xf32> to vector<8x128xf32>
    %92 = arith.addf %87, %91 : vector<8x128xf32>
    %cst_39 = arith.constant dense<0.000000e+00> : vector<8x128xf32>
    %93 = tpu.matmul %92, %62, %cst_39 {dimension_numbers = #tpu.dot_dimension_numbers<[1], [0], [0], [1], [0, 0, 1, 1], [], []>} : vector<8x128xf32>, vector<128x128xf32>, vector<8x128xf32> -> vector<8x128xf32>
    %c1_40 = arith.constant 1 : index
    %c0_41 = arith.constant 0 : index
    %94 = vector.load %arg7[%c1_40, %c0_41] : memref<2x128xf32, #tpu.memory_space<vmem>>, vector<1x128xf32>
    %95 = vector.shape_cast %94 : vector<1x128xf32> to vector<128xf32>
    %96 = vector.shape_cast %95 : vector<128xf32> to vector<1x128xf32>
    %97 = vector.broadcast %96 : vector<1x128xf32> to vector<8x128xf32>
    %98 = arith.addf %93, %97 : vector<8x128xf32>
    %cst_42 = arith.constant 5.000000e-01 : f32
    %99 = vector.broadcast %cst_42 : f32 to vector<8x128xf32>
    %100 = arith.mulf %99, %98 : vector<8x128xf32>
    %cst_43 = arith.constant 0.707106769 : f32
    %101 = vector.broadcast %cst_43 : f32 to vector<8x128xf32>
    %102 = arith.mulf %98, %101 : vector<8x128xf32>
    %103 = math.erf %102 : vector<8x128xf32>
    %cst_44 = arith.constant 1.000000e+00 : f32
    %104 = vector.broadcast %cst_44 : f32 to vector<8x128xf32>
    %105 = arith.addf %104, %103 : vector<8x128xf32>
    %106 = arith.mulf %100, %105 : vector<8x128xf32>
    %107 = arith.addf %106, %60 : vector<8x128xf32>
    %c0_45 = arith.constant 0 : index
    %c0_46 = arith.constant 0 : index
    %108 = vector.load %arg8[%c0_45, %c0_46] : memref<128x128xf32, #tpu.memory_space<vmem>>, vector<128x128xf32>
    %cst_47 = arith.constant dense<0.000000e+00> : vector<8x128xf32>
    %109 = tpu.matmul %107, %108, %cst_47 {dimension_numbers = #tpu.dot_dimension_numbers<[1], [0], [0], [1], [0, 0, 1, 1], [], []>} : vector<8x128xf32>, vector<128x128xf32>, vector<8x128xf32> -> vector<8x128xf32>
    %c0_48 = arith.constant 0 : index
    %c0_49 = arith.constant 0 : index
    %110 = vector.load %arg9[%c0_48, %c0_49] : memref<1x128xf32, #tpu.memory_space<vmem>>, vector<1x128xf32>
    %111 = vector.broadcast %110 : vector<1x128xf32> to vector<8x128xf32>
    %112 = arith.addf %109, %111 : vector<8x128xf32>
    %c0_50 = arith.constant 0 : index
    %c0_51 = arith.constant 0 : index
    %113 = vector.load %arg10[%c0_50, %c0_51] : memref<8x128xf32, #tpu.memory_space<vmem>>, vector<8x128xf32>
    tpu.vector_store %arg10[%c0_50, %c0_51], %112 {strides = array<i32>} : memref<8x128xf32, #tpu.memory_space<vmem>>, vector<8x128xf32>,
    return
  }
  func.func @transform_0(%arg0: i32) -> (i32, i32) {
    %c0_i32 = arith.constant 0 : i32
    %c0_i32_0 = arith.constant 0 : i32
    return %arg0, %c0_i32 : i32, i32
  }
  func.func @transform_1(%arg0: i32) -> (i32, i32) {
    %c0_i32 = arith.constant 0 : i32
    %c0_i32_0 = arith.constant 0 : i32
    %c0_i32_1 = arith.constant 0 : i32
    return %c0_i32, %c0_i32_0 : i32, i32
  }
  func.func @transform_2(%arg0: i32) -> (i32, i32) {
    %c0_i32 = arith.constant 0 : i32
    %c0_i32_0 = arith.constant 0 : i32
    %c0_i32_1 = arith.constant 0 : i32
    return %c0_i32, %c0_i32_0 : i32, i32
  }
  func.func @transform_3(%arg0: i32) -> (i32, i32) {
    %c0_i32 = arith.constant 0 : i32
    %c0_i32_0 = arith.constant 0 : i32
    %c0_i32_1 = arith.constant 0 : i32
    return %c0_i32, %c0_i32_0 : i32, i32
  }
  func.func @transform_4(%arg0: i32) -> (i32, i32) {
    %c0_i32 = arith.constant 0 : i32
    %c0_i32_0 = arith.constant 0 : i32
    %c0_i32_1 = arith.constant 0 : i32
    return %c0_i32, %c0_i32_0 : i32, i32
  }
  func.func @transform_5(%arg0: i32) -> (i32, i32, i32) {
    %c0_i32 = arith.constant 0 : i32
    %c0_i32_0 = arith.constant 0 : i32
    %c0_i32_1 = arith.constant 0 : i32
    %c0_i32_2 = arith.constant 0 : i32
    return %c0_i32, %c0_i32_0, %c0_i32_1 : i32, i32, i32
  }
  func.func @transform_6(%arg0: i32) -> (i32, i32) {
    %c0_i32 = arith.constant 0 : i32
    %c0_i32_0 = arith.constant 0 : i32
    %c0_i32_1 = arith.constant 0 : i32
    return %c0_i32, %c0_i32_0 : i32, i32
  }
  func.func @transform_7(%arg0: i32) -> (i32, i32) {
    %c0_i32 = arith.constant 0 : i32
    %c0_i32_0 = arith.constant 0 : i32
    %c0_i32_1 = arith.constant 0 : i32
    return %c0_i32, %c0_i32_0 : i32, i32
  }
  func.func @transform_8(%arg0: i32) -> (i32, i32) {
    %c0_i32 = arith.constant 0 : i32
    %c0_i32_0 = arith.constant 0 : i32
    %c0_i32_1 = arith.constant 0 : i32
    return %c0_i32, %c0_i32_0 : i32, i32
  }
  func.func @transform_9(%arg0: i32) -> (i32, i32) {
    %c0_i32 = arith.constant 0 : i32
    %c0_i32_0 = arith.constant 0 : i32
    return %arg0, %c0_i32 : i32, i32
  }
}

</mosaic_0001>

<bundles_post_ra>
// kernel: tpu_custom_call.1
= control target key start
LH: loop header
LB: loop body
LE: loop exit
PB: predicated region body
PF: predicated region fallthrough
CT: control target
= control target key end

     0   :  { %s1809_s0 = inlined_call_operand.hbm [shape: f32[16,128], index: 0, kind: input, shape index: {}]   ;;  %s1810_s1 = inlined_call_operand.hbm [shape: f32[128,128], index: 1, kind: input, shape index: {}]   ;;  %s1811_s2 = inlined_call_operand.vmem [shape: f32[1,128], index: 2, kind: input, shape index: {}]   ;;  %s1812_s3 = inlined_call_operand.vmem [shape: f32[2,128], index: 3, kind: input, shape index: {}]   ;;  %s1813_s4 = inlined_call_operand.vmem [shape: f32[2,128], index: 4, kind: input, shape index: {}]   ;;  %s1814_s5 = inlined_call_operand.hbm [shape: f32[2,128,128], index: 5, kind: input, shape index: {}]   ;;  %s1815_s6 = inlined_call_operand.vmem [shape: f32[2,128], index: 6, kind: input, shape index: {}]   ;;  %s1816_s7 = inlined_call_operand.hbm [shape: f32[128,128], index: 7, kind: input, shape index: {}]   ;;  %s1817_s8 = inlined_call_operand.vmem [shape: f32[1,128], index: 8, kind: input, shape index: {}]   ;;  %s1818_s9 = inlined_call_operand.hbm [shape: f32[16,128], index: 9, kind: output, shape index: {}]  }
   0x1   :  { %1823 = sst [smem:[#allocation16_spill]] %s1810_s1 }
   0x2   :  { %1824 = sst [smem:[#allocation17_spill]] %s1814_s5 }
   0x3   :  { %1825 = sst [smem:[#allocation18_spill]] %s1816_s7 }
   0x4   :  { %14 = vsyncpa [#allocation3], 0 }
   0x5   :  { %16 = vsyncpa [#allocation3 + $0x1], 0 }
   0x6   :  { %17 = vsyncpa [#allocation6], 0 }
   0x7   :  { %18 = vsyncpa [#allocation9], 0 }
   0x8   :  { %19 = vsyncpa [#allocation4], 0 }
   0x9   :  { %21 = vsyncpa [#allocation4 + $0x1], 0  ;;  %s1509_s30 = smov 0   ;;  %s1511_s10 = smov 0  }
   0xa   :  { %s1513_s11 = smov 0   ;;  %s1515_s12 = smov 0  }
   0xb LB: > { %s1530_s13 = sadd.s32 4294967295, %s1448_s12   ;;  %s945_s14 = sadd.s32 4294967294, %s1448_s12   ;;  %s1448_s12 = sphi %s1515_s12, %s1850_s12   ;;  %s1444_s11 = sphi %s1513_s11, %s1849_s11   ;;  %s1440_s10 = sphi %s1511_s10, %s1848_s10   ;;  %s1436_s30 = sphi %s1509_s30, %s1847_s30  }
   0xc   : > { %p47_p0 = scmp.ne.s32.totalorder %s1440_s10, %s1436_s30  ;;  %p1819_p1 = scmp.eq.s32.totalorder %s1530_s13, 0 }
   0xd   : > { %p245_p3 = scmp.eq.s32.totalorder %s945_s14, 1  ;;  %p946_p5 = scmp.ge.s32.totalorder %s1448_s12, 1 }
   0xe   : > { %p1539_p4 = por %p1819_p1, %p47_p0  ;;  %p252_p7 = scmp.lt.s32.totalorder %s1448_s12, 3 }
   0xf   : > { %p1544_p6 = por %p245_p3, %p47_p0  ;;  %s1450_s18 = smov [#allocation5]  }
  0x10   : > { %s1826_s15 = scalar_select %p1539_p4, 1, 0 }
  0x11   : > { %s1827_s16 = scalar_select %p1544_p6, 1, 0 }
  0x12   : > { %p1549_p8 = pnand %p946_p5, %p252_p7  ;;  %s264_s19 = sshll.u32 %s1450_s18, 4  ;;  %s265_s19 = int_to_ptr.vmem [resolvable:$true] %s264_s19 }
  0x13   : > { %s1451_s21 = smov [#allocation7]   ;;  %s1452_s23 = smov [#allocation8]  }
  0x14   : > { %s1828_s17 = scalar_select %p1549_p8, 1, 0 }
  0x15   : > { %p1195_p9 = pneg %p1549_p8  ;;  %s286_s22 = sshll.u32 %s1451_s21, 4  ;;  %s287_s22 = int_to_ptr.vmem [resolvable:$true] %s286_s22 }
  0x16   : > { %s302_s24 = sshll.u32 %s1452_s23, 4  ;;  %s1281_s25 = scalar_lea.vmem %s265_s19, 2048  ;;  %s303_s24 = int_to_ptr.vmem [resolvable:$true] %s302_s24 }
  0x17   : > { %p1558_p11 = pnand %p1195_p9, %p1819_p1  ;;  %p1282_p13 = scmp.ne.s32.totalorder %s265_s19, %s1281_s25 }
  0x18   : > { %p1289_p5 = scmp.lt.s32.totalorder %s265_s19, %s265_s19  ;;  %p1290_p7 = scmp.lt.s32.totalorder %s1281_s25, %s1281_s25 }
  0x19   : > { %p1272_p12 = pneg %p1558_p11 }
  0x1a   : > { %p1291_p9 = por %p1290_p7, %p1289_p5 }
  0x1b   : > { %p1284_p0 = pnand %p1282_p13, %p1272_p12 }
  0x1d   : > { %p1285_p3 = pneg %p1284_p0 }
  0x1f   : > { %p1292_p10 = pnand %p1291_p9, %p1285_p3 }
  0x21   : > { %1295 = shalt.err (!%p1292_p10)
}
  0x22   : > { %s1453_s26 = smov 128   ;;  %s1454_s27 = smov 8  }
  0x23   : > { %s1830_s1 = sld [smem:[#allocation16_spill]]  ;;  %s1307_s14 = scalar_lea.vmem %s287_s22, 4096 }
  0x24   : > { %p1308_p1 = scmp.ne.s32.totalorder %s287_s22, %s1307_s14  ;;  %p1315_p2 = scmp.lt.s32.totalorder %s287_s22, %s287_s22 }
  0x25   : > { %p1316_p6 = scmp.lt.s32.totalorder %s1307_s14, %s1307_s14 }
  0x26   : > { %p1310_p13 = pnand %p1308_p1, %p1272_p12 }
  0x27   : > { %p1317_p5 = por %p1316_p6, %p1315_p2 }
  0x28   : > { %p1311_p0 = pneg %p1310_p13 }
  0x29   : > { %1198 = dma.hbm_to_vmem [thread:$0]  (!%p1558_p11), %s1830_s1, 2048, %s265_s19, [#allocation6], %s1453_s26, %s1453_s26, %s1454_s27  }
  0x2a   : > { %p1318_p3 = pnand %p1317_p5, %p1311_p0 }
  0x2c   : > { %1321 = shalt.err (!%p1318_p3)
}
  0x2d   : > { %s1831_s5 = sld [smem:[#allocation17_spill]]  ;;  %s1333_s19 = scalar_lea.vmem %s303_s24, 2048 }
  0x2e   : > { %p1334_p10 = scmp.ne.s32.totalorder %s303_s24, %s1333_s19  ;;  %p1341_p9 = scmp.lt.s32.totalorder %s303_s24, %s303_s24 }
  0x2f   : > { %p1342_p13 = scmp.lt.s32.totalorder %s1333_s19, %s1333_s19 }
  0x30   : > { %p1336_p7 = pnand %p1334_p10, %p1272_p12 }
  0x31   : > { %p1343_p4 = por %p1342_p13, %p1341_p9 }
  0x32   : > { %p1337_p1 = pneg %p1336_p7 }
  0x33   : > { %1201 = dma.hbm_to_vmem [thread:$0]  (!%p1558_p11), %s1831_s5, 4096, %s287_s22, [#allocation6], %s1453_s26, %s1453_s26, %s1454_s27  }
  0x34   : > { %p1344_p2 = pnand %p1343_p4, %p1337_p1 }
  0x36   : > { %1347 = shalt.err (!%p1344_p2)
}
  0x37   : > { %s1832_s7 = sld [smem:[#allocation18_spill]]  ;;  %s1589_s22 = sadd.s32 1, %s1448_s12  }
  0x38   : > { %s31_s28 = ssub.s32 %s1448_s12, %s1589_s22  ;;  %s34_s20 = sadd.s32 1, %s1444_s11 }
  0x39   : > { %p32_p4 = scmp.eq.s32.totalorder %s31_s28, 0  ;;  %p41_p6 = scmp.ne.s32.totalorder %s1444_s11, %s1440_s10 }
  0x3a   : > { %p42_p12 = scmp.eq.s32.totalorder %s1448_s12, 0  ;;  %p1216_p0 = scmp.lt.s32.totalorder %s1448_s12, 2 }
  0x3b   : > { %s1599_s29 = scalar_select %p32_p4, %s1444_s11, %s34_s20  }
  0x3c   : > { %p43_p5 = por %p42_p12, %p41_p6  ;;  %p1834_p3 = scmp.eq.s32.totalorder %s1530_s13, 1 }
  0x3d   : > { %1204 = dma.hbm_to_vmem [thread:$0]  (!%p1558_p11), %s1832_s7, 2048, %s303_s24, [#allocation9], %s1453_s26, %s1453_s26, %s1454_s27  }
  0x3e   : > { %1833 = sst [smem:[#allocation15_spill]] %s1599_s29  ;;  %p1603_p10 = por %p1834_p3, %p41_p6 }
  0x3f   : > { %s319_s18 = sand.u32 1, %s1444_s11   ;;  %s952_s21 = sshll.u32 %s1448_s12, 7 }
  0x40   : > { %s1835_s14 = scalar_select %p1603_p10, 1, 0 }
  0x41   : > { %s951_s24 = sshll.u32 %s319_s18, 3  ;;  %s1612_s19 = scalar_lea.hbm %s1809_s0, %s952_s21 }
  0x42   : > { %s323_s23 = scalar_lea.vmem [#allocation2], %s951_s24  ;;  %p1614_p11 = pnand %p1216_p0, %p43_p5 }
  0x43   : > { %s330_s25 = sshll.u32 %s323_s23, 4  ;;  %s320_s20 = scalar_lea.sflag [#allocation3], %s319_s18  ;;  %s331_s25 = int_to_ptr.vmem [resolvable:$true] %s330_s25 }
  0x44   : > { %s1348_s1 = scalar_lea.hbm %s1612_s19, 128  ;;  %p1350_p1 = pneg %p1614_p11 }
  0x45   : > { %p1349_p7 = scmp.ne.s32.totalorder %s1612_s19, %s1348_s1  ;;  %s1353_s27 = scalar_lea.hbm %s1809_s0, 256 }
  0x46   : > { %p1354_p2 = scmp.lt.s32.totalorder %s1612_s19, %s1809_s0  ;;  %p1355_p4 = scmp.lt.s32.totalorder %s1353_s27, %s1348_s1 }
  0x47   : > { %p1351_p9 = pnand %p1350_p1, %p1349_p7 }
  0x48   : > { %p1356_p6 = por %p1355_p4, %p1354_p2 }
  0x49   : > { %p1352_p13 = pneg %p1351_p9 }
  0x4b   : > { %p1357_p12 = pnand %p1356_p6, %p1352_p13 }
  0x4d   : > { %1360 = shalt.err (!%p1357_p12)
}
  0x4e   : > { %s1361_s23 = scalar_lea.vmem %s331_s25, 128  ;;  %s1455_s18 = smov [#allocation2]  }
  0x4f   : > { %p1362_p0 = scmp.ne.s32.totalorder %s331_s25, %s1361_s23  ;;  %s1366_s7 = sshll.u32 %s1455_s18, 4  ;;  %s1367_s7 = int_to_ptr.vmem [resolvable:$false] %s1366_s7 }
  0x50   : > { %s1368_s29 = scalar_lea.vmem %s1367_s7, 256  ;;  %p1369_p7 = scmp.lt.s32.totalorder %s331_s25, %s1367_s7 }
  0x51   : > { %p1364_p5 = pnand %p1362_p0, %p1350_p1  ;;  %p1370_p9 = scmp.lt.s32.totalorder %s1368_s29, %s1361_s23 }
  0x53   : > { %p1365_p3 = pneg %p1364_p5  ;;  %p1371_p10 = por %p1370_p9, %p1369_p7 }
  0x55   : > { %p1372_p8 = pnand %p1371_p10, %p1365_p3 }
  0x57   : > { %1375 = shalt.err (!%p1372_p8)
}
  0x58   : > { %1208 = dma.hbm_to_vmem [thread:$0]  (!%p1614_p11), %s1612_s19, 128, %s331_s25, %s320_s20  }
  0x59   : > { %p1837_p13 = scmp.ne.s32.totalorder %s1828_s17, 0 }
  0x5a   : > { %s1635_s1 = sand.u32 (!%p1837_p13), 1, %s1440_s10   ;;  %p1838_p8 = scmp.ne.s32.totalorder (!%p1837_p13), %s1826_s15, 0 }
  0x5b   : > { %339 = sbr.rel (%p1837_p13) target bundleno = 1334 (0x536), region = 56  ;;  %s954_s5 = sshll.u32 (!%p1837_p13), %s1635_s1, 3 }
  0x5c   : > { %s342_s7 = scalar_lea.sflag (!%p1837_p13), [#allocation3], %s1635_s1  ;;  %s1641_s29 = scalar_lea.vmem (!%p1837_p13), [#allocation2], %s954_s5 }
  0x60   : > { %1419 = dma.done.wait (%p1838_p8), %s342_s7, 128  }
  0x61   : > { %1421 = vsyncadd (%p1838_p8), %s342_s7, 4294967168  ;;  %p1839_p10 = scmp.eq.s32.totalorder %s1530_s13, 0 }
  0x63   : > { %1423 = dma.done.wait (%p1839_p10), [#allocation6], 6144   ;;  %p1840_p11 = pmov %p1839_p10 }
  0x64   : > { %p1841_p1 = pmov %p1839_p10 }
  0x65   : > { %1425 = vsyncadd (%p1840_p11), [#allocation6], 4294961152 }
  0x66   : > { %1427 = dma.done.wait (%p1841_p1), [#allocation9], 2048   ;;  %p1842_p2 = pmov %p1841_p1 }
  0x67   : > { %v1456_v0 = vmov 0.0   ;;  %vm1457_vm0 = vmmov 0   ;;  %v408_v1 = vld [vmem:[#allocation5 + $0x78] sm:$0xff]  ;;  %v407_v2 = vld [vmem:[#allocation5 + $0x70] sm:$0xff]  ;;  %v406_v3 = vld [vmem:[#allocation5 + $0x68] sm:$0xff]  ;;  %s968_s19 = sshll.u32 %s1530_s13, 7 }
  0x68   : > { %1429 = vsyncadd (%p1842_p2), [#allocation9], 4294965248  ;;  %1039 = vmatprep.subr.mxu0 %v1456_v0  ;;  %1071 = vmatprep.mubr.msk.f32.mxu0 %vm1457_vm0, %v1456_v0  ;;  %v405_v4 = vld [vmem:[#allocation5 + $0x60] sm:$0xff]  ;;  %v404_v5 = vld [vmem:[#allocation5 + $0x58] sm:$0xff]  ;;  %s391_s25 = scalar_lea.vmem [#allocation10], %s954_s5  ;;  %s1772_s26 = scalar_lea.hbm %s1818_s9, %s968_s19 }
  0x69   : > { %1074 = vmatprep.subr.mxu1 %v1456_v0  ;;  %1106 = vmatprep.mubr.msk.f32.mxu1 %vm1457_vm0, %v1456_v0  ;;  %v403_v6 = vld [vmem:[#allocation5 + $0x50] sm:$0xff]  ;;  %v402_v7 = vld [vmem:[#allocation5 + $0x48] sm:$0xff]  ;;  %v401_v8 = vld [vmem:[#allocation5 + $0x40] sm:$0xff]  ;;  %s846_s28 = sshll.u32 %s391_s25, 4  ;;  %s833_s27 = scalar_lea.sflag [#allocation4], %s1635_s1  ;;  %s847_s28 = int_to_ptr.vmem [resolvable:$true] %s846_s28 }
  0x6a   : > { %1040 = vmatpush3.msra.mxu0 %v408_v1  ;;  %v400_v9 = vld [vmem:[#allocation5 + $0x38] sm:$0xff]  ;;  %v399_v10 = vld [vmem:[#allocation5 + $0x30] sm:$0xff]  ;;  %v398_v11 = vld [vmem:[#allocation5 + $0x28] sm:$0xff]  ;;  %s1376_s24 = scalar_lea.vmem %s847_s28, 128  ;;  %p1843_p6 = scmp.ne.s32.totalorder %s1835_s14, 0 }
  0x6b   : > { %1041 = vmatprep.subr.mxu0 %v1456_v0  ;;  %v397_v12 = vld [vmem:[#allocation5 + $0x20] sm:$0xff]  ;;  %v396_v13 = vld [vmem:[#allocation5 + $0x18] sm:$0xff]  ;;  %v395_v14 = vld [vmem:[#allocation5 + $0x10] sm:$0xff]  ;;  %p1377_p4 = scmp.ne.s32.totalorder %s847_s28, %s1376_s24  ;;  %s1458_s13 = smov [#allocation10]  }
  0x6c   : > { %1042 = vmatpush3.msra.mxu0 %v407_v2  ;;  %v394_v15 = vld [vmem:[#allocation5 + $0x8] sm:$0xff]  ;;  %v393_v16 = vld [vmem:[#allocation5] sm:$0xff]  ;;  %v392_v17 = vld [vmem:[%s1641_s29] sm:$0xff]  ;;  %s1380_s23 = sshll.u32 %s1458_s13, 4  ;;  %s1381_s23 = int_to_ptr.vmem [resolvable:$false] %s1380_s23 }
  0x6d   : > { %1043 = vmatprep.subr.mxu0 %v1456_v0  ;;  %v959_v18 = vld [vmem:[%s1811_s2] ss:$0 sm:$0xff]  ;;  %v506_v28 = vld [vmem:[#allocation7 + $0x78] sm:$0xff]  ;;  %v504_v30 = vld [vmem:[#allocation7 + $0x68] sm:$0xff]  ;;  %p1378_p12 = pnand %p1377_p4, %p1843_p6  ;;  %s1382_s5 = scalar_lea.vmem %s1381_s23, 256 }
  0x6e   : > { %1044 = vmatpush3.msra.mxu0 %v406_v3  ;;  %1075 = vmatpush3.msra.mxu1 %v506_v28  ;;  %v505_v29 = vld [vmem:[#allocation7 + $0x70] sm:$0xff]  ;;  %v503_v31 = vld [vmem:[#allocation7 + $0x60] sm:$0xff]  ;;  %v502_v32 = vld [vmem:[#allocation7 + $0x58] sm:$0xff]  ;;  %p1383_p5 = scmp.lt.s32.totalorder %s847_s28, %s1381_s23  ;;  %p1384_p3 = scmp.lt.s32.totalorder %s1382_s5, %s1376_s24 }
  0x6f   : > { %1045 = vmatprep.subr.mxu0 %v1456_v0  ;;  %1076 = vmatprep.subr.mxu1 %v1456_v0  ;;  %v501_v33 = vld [vmem:[#allocation7 + $0x50] sm:$0xff]  ;;  %v500_v34 = vld [vmem:[#allocation7 + $0x48] sm:$0xff]  ;;  %v499_v35 = vld [vmem:[#allocation7 + $0x40] sm:$0xff]  ;;  %p1379_p0 = pneg %p1378_p12 }
  0x70   : > { %1046 = vmatpush3.msra.mxu0 %v405_v4  ;;  %1077 = vmatpush3.msra.mxu1 %v505_v29  ;;  %v498_v36 = vld [vmem:[#allocation7 + $0x38] sm:$0xff]  ;;  %v497_v37 = vld [vmem:[#allocation7 + $0x30] sm:$0xff]  ;;  %v496_v38 = vld [vmem:[#allocation7 + $0x28] sm:$0xff]  ;;  %p1385_p7 = por %p1384_p3, %p1383_p5 }
  0x71   : > { %1047 = vmatprep.subr.mxu0 %v1456_v0  ;;  %1078 = vmatprep.subr.mxu1 %v1456_v0  ;;  %v495_v39 = vld [vmem:[#allocation7 + $0x20] sm:$0xff]  ;;  %v494_v40 = vld [vmem:[#allocation7 + $0x18] sm:$0xff]  ;;  %v493_v41 = vld [vmem:[#allocation7 + $0x10] sm:$0xff] }
  0x72   : > { %1048 = vmatpush3.msra.mxu0 %v404_v5  ;;  %1079 = vmatpush3.msra.mxu1 %v504_v30  ;;  %v492_v42 = vld [vmem:[#allocation7 + $0x8] sm:$0xff]  ;;  %v491_v43 = vld [vmem:[#allocation7] sm:$0xff]  ;;  %v960_v54 = vld [vmem:[%s1812_s3] ss:$0 sm:$0xff]  ;;  %p1386_p9 = pnand %p1385_p7, %p1379_p0 }
  0x73   : > { %1049 = vmatprep.subr.mxu0 %v1456_v0  ;;  %1080 = vmatprep.subr.mxu1 %v1456_v0  ;;  %v961_v56 = vld [vmem:[%s1813_s4] ss:$0 sm:$0xff] }
  0x74   : > { %1050 = vmatpush3.msra.mxu0 %v403_v6  ;;  %1081 = vmatpush3.msra.mxu1 %v503_v31  ;;  %v962_v59 = vld [vmem:[%s1815_s6] ss:$0 sm:$0xff] }
  0x75   : > { %1051 = vmatprep.subr.mxu0 %v1456_v0  ;;  %1082 = vmatprep.subr.mxu1 %v1456_v0 }
  0x76   : > { %1052 = vmatpush3.msra.mxu0 %v402_v7  ;;  %1083 = vmatpush3.msra.mxu1 %v502_v32  ;;  %v630_v7 = vld [vmem:[#allocation7 + $0xf8] sm:$0xff] }
  0x77   : > { %1053 = vmatprep.subr.mxu0 %v1456_v0  ;;  %1084 = vmatprep.subr.mxu1 %v1456_v0 }
  0x78   : > { %1054 = vmatpush3.msra.mxu0 %v401_v8  ;;  %1085 = vmatpush3.msra.mxu1 %v501_v33  ;;  %v629_v8 = vld [vmem:[#allocation7 + $0xf0] sm:$0xff] }
  0x79   : > { %1055 = vmatprep.subr.mxu0 %v1456_v0  ;;  %1086 = vmatprep.subr.mxu1 %v1456_v0 }
  0x7a   : > { %1056 = vmatpush3.msra.mxu0 %v400_v9  ;;  %1087 = vmatpush3.msra.mxu1 %v500_v34  ;;  %v628_v9 = vld [vmem:[#allocation7 + $0xe8] sm:$0xff] }
  0x7b   : > { %1057 = vmatprep.subr.mxu0 %v1456_v0  ;;  %1088 = vmatprep.subr.mxu1 %v1456_v0 }
  0x7c   : > { %1058 = vmatpush3.msra.mxu0 %v399_v10  ;;  %1089 = vmatpush3.msra.mxu1 %v499_v35  ;;  %v627_v10 = vld [vmem:[#allocation7 + $0xe0] sm:$0xff] }
  0x7d   : > { %1059 = vmatprep.subr.mxu0 %v1456_v0  ;;  %1090 = vmatprep.subr.mxu1 %v1456_v0 }
  0x7e   : > { %1060 = vmatpush3.msra.mxu0 %v398_v11  ;;  %1091 = vmatpush3.msra.mxu1 %v498_v36  ;;  %v626_v11 = vld [vmem:[#allocation7 + $0xd8] sm:$0xff]  ;;  %v963_v36 = vld [vmem:[%s1812_s3 + $0x1] ss:$0 sm:$0xff] }
  0x7f   : > { %1061 = vmatprep.subr.mxu0 %v1456_v0  ;;  %1092 = vmatprep.subr.mxu1 %v1456_v0 }
  0x80   : > { %1062 = vmatpush3.msra.mxu0 %v397_v12  ;;  %1093 = vmatpush3.msra.mxu1 %v497_v37  ;;  %v625_v12 = vld [vmem:[#allocation7 + $0xd0] sm:$0xff] }
  0x81   : > { %1063 = vmatprep.subr.mxu0 %v1456_v0  ;;  %1094 = vmatprep.subr.mxu1 %v1456_v0 }
  0x82   : > { %1064 = vmatpush3.msra.mxu0 %v396_v13  ;;  %1095 = vmatpush3.msra.mxu1 %v496_v38  ;;  %v624_v13 = vld [vmem:[#allocation7 + $0xc8] sm:$0xff]  ;;  %v964_v38 = vld [vmem:[%s1813_s4 + $0x1] ss:$0 sm:$0xff] }
  0x83   : > { %1065 = vmatprep.subr.mxu0 %v1456_v0  ;;  %1096 = vmatprep.subr.mxu1 %v1456_v0 }
  0x84   : > { %1066 = vmatpush3.msra.mxu0 %v395_v14  ;;  %1097 = vmatpush3.msra.mxu1 %v495_v39  ;;  %v623_v14 = vld [vmem:[#allocation7 + $0xc0] sm:$0xff] }
  0x85   : > { %1067 = vmatprep.subr.mxu0 %v1456_v0  ;;  %1098 = vmatprep.subr.mxu1 %v1456_v0 }
  0x86   : > { %1068 = vmatpush3.msra.mxu0 %v394_v15  ;;  %1099 = vmatpush3.msra.mxu1 %v494_v40  ;;  %v622_v15 = vld [vmem:[#allocation7 + $0xb8] sm:$0xff] }
  0x87   : > { %1069 = vmatprep.subr.mxu0 %v1456_v0  ;;  %1100 = vmatprep.subr.mxu1 %v1456_v0 }
  0x88   : > { %1070 = vmatpush3.msra.mxu0 %v393_v16  ;;  %1101 = vmatpush3.msra.mxu1 %v493_v41  ;;  %v621_v16 = vld [vmem:[#allocation7 + $0xb0] sm:$0xff]  ;;  %v750_v41 = vld [vmem:[#allocation8 + $0x60] sm:$0xff] }
  0x89   : > { %1072 = vmatmul.mubr.f32.vlgmr.msra.gmra.mxu0 %v392_v17  ;;  %1109 = vmatprep.subr.mxu0 %v1456_v0  ;;  %v620_v17 = vld [vmem:[#allocation7 + $0xa8] sm:$0xff] }
  0x8a   : > { %1141 = vmatprep.mubr.msk.f32.mxu0 %vm1457_vm0, %v1456_v0  ;;  %1102 = vmatprep.subr.mxu1 %v1456_v0 }
  0x8b   : > { %1103 = vmatpush3.msra.mxu1 %v492_v42  ;;  %1110 = vmatpush3.msra.mxu0 %v630_v7  ;;  %v749_v42 = vld [vmem:[#allocation8 + $0x58] sm:$0xff] }
  0x8c   : > { %1104 = vmatprep.subr.mxu1 %v1456_v0  ;;  %1111 = vmatprep.subr.mxu0 %v1456_v0 }
  0x8d   : > { %1105 = vmatpush3.msra.mxu1 %v491_v43  ;;  %1112 = vmatpush3.msra.mxu0 %v629_v8  ;;  %v748_v43 = vld [vmem:[#allocation8 + $0x50] sm:$0xff] }
  0x8e   : > { %1144 = vmatprep.subr.mxu1 %v1456_v0  ;;  %1113 = vmatprep.subr.mxu0 %v1456_v0 }
  0x8f   : > { %1114 = vmatpush3.msra.mxu0 %v628_v9 }
  0x90   : > { %1115 = vmatprep.subr.mxu0 %v1456_v0 }
  0x91   : > { %1116 = vmatpush3.msra.mxu0 %v627_v10 }
  0x92   : > { %1117 = vmatprep.subr.mxu0 %v1456_v0 }
  0x93   : > { %1118 = vmatpush3.msra.mxu0 %v626_v11 }
  0x94   : > { %1119 = vmatprep.subr.mxu0 %v1456_v0 }
  0x95   : > { %1120 = vmatpush3.msra.mxu0 %v625_v12 }
  0x96   : > { %1121 = vmatprep.subr.mxu0 %v1456_v0 }
  0x97   : > { %1122 = vmatpush3.msra.mxu0 %v624_v13 }
  0x98   : > { %1123 = vmatprep.subr.mxu0 %v1456_v0 }
  0x99   : > { %1124 = vmatpush3.msra.mxu0 %v623_v14 }
  0x9a   : > { %1125 = vmatprep.subr.mxu0 %v1456_v0 }
  0x9b   : > { %1126 = vmatpush3.msra.mxu0 %v622_v15 }
  0x9c   : > { %1127 = vmatprep.subr.mxu0 %v1456_v0 }
  0x9d   : > { %1128 = vmatpush3.msra.mxu0 %v621_v16 }
  0x9e   : > { %1129 = vmatprep.subr.mxu0 %v1456_v0 }
  0x9f   : > { %1130 = vmatpush3.msra.mxu0 %v620_v17 }
  0xa0   : > { %1131 = vmatprep.subr.mxu0 %v1456_v0 }
 0x149   : > { %v482_v19 = vpop.f32.mrf.mxu0 }
 0x14a   : > { %v483_v20 = vadd.f32 %v959_v18, %v482_v19  ;;  %v619_v18 = vld [vmem:[#allocation7 + $0xa0] sm:$0xff]  ;;  %v618_v19 = vld [vmem:[#allocation7 + $0x98] sm:$0xff] }
 0x14b   : > { %v1073_v21 = vpop.f32.mrf.mxu0  ;;  %1132 = vmatpush3.msra.mxu0 %v619_v18 }
 0x14c   : > { %v487_v22 = vmul.f32 0.70710677, %v483_v20  ;;  %v486_v24 = vmul.f32 0.5, %v483_v20  ;;  %1133 = vmatprep.subr.mxu0 %v1456_v0  ;;  %v617_v20 = vld [vmem:[#allocation7 + $0x90] sm:$0xff]  ;;  %v616_v21 = vld [vmem:[#allocation7 + $0x88] sm:$0xff] }
 0x14d   : > { %1134 = vmatpush3.msra.mxu0 %v618_v19 }
 0x14e   : > { %1260 = verf.f32 %v487_v22  ;;  %1135 = vmatprep.subr.mxu0 %v1456_v0  ;;  %v615_v22 = vld [vmem:[#allocation7 + $0x80] sm:$0xff] }
 0x14f   : > { %1136 = vmatpush3.msra.mxu0 %v617_v20 }
 0x150   : > { %1137 = vmatprep.subr.mxu0 %v1456_v0 }
 0x151   : > { %1138 = vmatpush3.msra.mxu0 %v616_v21 }
 0x152   : > { %1139 = vmatprep.subr.mxu0 %v1456_v0 }
 0x153   : > { %1140 = vmatpush3.msra.mxu0 %v615_v22 }
 0x15b   : > { %v1261_v23 = vpop.eup %1260 }
 0x15c   : > { %v489_v25 = vadd.f32 1.0, %v1261_v23  ;;  %v753_v23 = vld [vmem:[#allocation8 + $0x78] sm:$0xff] }
 0x15e   : > { %v1683_v26 = vmul.f32 %v489_v25, %v486_v24  ;;  %v752_v24 = vld [vmem:[#allocation8 + $0x70] sm:$0xff]  ;;  %v751_v25 = vld [vmem:[#allocation8 + $0x68] sm:$0xff] }
 0x160   : > { %507 = vadd.xlane.f32.xlu0 %v1683_v26  ;;  %v510_v27 = vmul.f32 %v1683_v26, %v1683_v26 }
 0x164   : > { %511 = vadd.xlane.f32.xlu0 %v510_v27 }
 0x1e9   : > { %v508_v44 = vpop.xlane.xlu0 %507 }
 0x1ea   : > { %v509_v45 = vmul.f32 0.03125, %v508_v44  ;;  %v747_v44 = vld [vmem:[#allocation8 + $0x48] sm:$0xff] }
 0x1ec   : > { %v514_v47 = vmul.f32 %v509_v45, %v509_v45  ;;  %v517_v52 = vsub.f32 %v1683_v26, %v509_v45  ;;  %v746_v45 = vld [vmem:[#allocation8 + $0x40] sm:$0xff] }
 0x1ed   : > { %v512_v46 = vpop.xlane.xlu0 %511 }
 0x1ee   : > { %v513_v48 = vmul.f32 0.03125, %v512_v46  ;;  %v745_v46 = vld [vmem:[#allocation8 + $0x38] sm:$0xff] }
 0x1f0   : > { %v515_v49 = vsub.f32 %v513_v48, %v514_v47  ;;  %v744_v47 = vld [vmem:[#allocation8 + $0x30] sm:$0xff]  ;;  %v743_v48 = vld [vmem:[#allocation8 + $0x28] sm:$0xff] }
 0x1f2   : > { %v516_v50 = vmax.f32 %v515_v49, 0.0  ;;  %v742_v49 = vld [vmem:[#allocation8 + $0x20] sm:$0xff] }
 0x1f4   : > { %v518_v51 = vadd.f32 1e-05, %v516_v50  ;;  %v741_v50 = vld [vmem:[#allocation8 + $0x18] sm:$0xff] }
 0x1f6   : > { %1262 = vrsqrt.f32 %v518_v51  ;;  %v740_v51 = vld [vmem:[#allocation8 + $0x10] sm:$0xff] }
 0x203   : > { %v1263_v53 = vpop.eup %1262 }
 0x204   : > { %v520_v55 = vmul.f32 %v1263_v53, %v517_v52  ;;  %v739_v52 = vld [vmem:[#allocation8 + $0x8] sm:$0xff]  ;;  %v738_v53 = vld [vmem:[#allocation8] sm:$0xff] }
 0x206   : > { %v526_v57 = vmul.f32 %v960_v54, %v520_v55  ;;  %v965_v54 = vld [vmem:[%s1815_s6 + $0x1] ss:$0 sm:$0xff] }
 0x208   : > { %v532_v58 = vadd.f32 %v961_v56, %v526_v57 }
 0x20a   : > { %1107 = vmatmul.mubr.f32.vlgmr.msra.gmra.mxu1 %v532_v58 }
 0x20b   : > { %1176 = vmatprep.mubr.msk.f32.mxu1 %vm1457_vm0, %v1456_v0  ;;  %1145 = vmatpush3.msra.mxu1 %v753_v23 }
 0x20c   : > { %1146 = vmatprep.subr.mxu1 %v1456_v0 }
 0x20d   : > { %1147 = vmatpush3.msra.mxu1 %v752_v24 }
 0x20e   : > { %1148 = vmatprep.subr.mxu1 %v1456_v0 }
 0x20f   : > { %1149 = vmatpush3.msra.mxu1 %v751_v25 }
 0x210   : > { %1150 = vmatprep.subr.mxu1 %v1456_v0 }
 0x211   : > { %1151 = vmatpush3.msra.mxu1 %v750_v41 }
 0x212   : > { %1152 = vmatprep.subr.mxu1 %v1456_v0 }
 0x213   : > { %1153 = vmatpush3.msra.mxu1 %v749_v42 }
 0x214   : > { %1154 = vmatprep.subr.mxu1 %v1456_v0 }
 0x215   : > { %1155 = vmatpush3.msra.mxu1 %v748_v43 }
 0x216   : > { %1156 = vmatprep.subr.mxu1 %v1456_v0 }
 0x217   : > { %1157 = vmatpush3.msra.mxu1 %v747_v44 }
 0x218   : > { %1158 = vmatprep.subr.mxu1 %v1456_v0 }
 0x219   : > { %1159 = vmatpush3.msra.mxu1 %v746_v45 }
 0x21a   : > { %1160 = vmatprep.subr.mxu1 %v1456_v0 }
 0x21b   : > { %1161 = vmatpush3.msra.mxu1 %v745_v46 }
 0x21c   : > { %1162 = vmatprep.subr.mxu1 %v1456_v0 }
 0x21d   : > { %1163 = vmatpush3.msra.mxu1 %v744_v47 }
 0x21e   : > { %1164 = vmatprep.subr.mxu1 %v1456_v0 }
 0x21f   : > { %1165 = vmatpush3.msra.mxu1 %v743_v48 }
 0x220   : > { %1166 = vmatprep.subr.mxu1 %v1456_v0 }
 0x221   : > { %1167 = vmatpush3.msra.mxu1 %v742_v49 }
 0x222   : > { %1168 = vmatprep.subr.mxu1 %v1456_v0 }
 0x223   : > { %1169 = vmatpush3.msra.mxu1 %v741_v50 }
 0x224   : > { %1170 = vmatprep.subr.mxu1 %v1456_v0 }
 0x225   : > { %1171 = vmatpush3.msra.mxu1 %v740_v51 }
 0x226   : > { %1172 = vmatprep.subr.mxu1 %v1456_v0 }
 0x227   : > { %1173 = vmatpush3.msra.mxu1 %v739_v52 }
 0x228   : > { %1174 = vmatprep.subr.mxu1 %v1456_v0 }
 0x229   : > { %1175 = vmatpush3.msra.mxu1 %v738_v53 }
 0x2ca   : > { %v604_v60 = vpop.f32.mrf.mxu1 }
 0x2cb   : > { %v605_v61 = vadd.f32 %v962_v59, %v604_v60 }
 0x2cc   : > { %v1108_v62 = vpop.f32.mrf.mxu1 }
 0x2cd   : > { %v609_v63 = vmul.f32 0.70710677, %v605_v61  ;;  %v608_v2 = vmul.f32 0.5, %v605_v61 }
 0x2cf   : > { %1264 = verf.f32 %v609_v63  ;;  %v966_v63 = vld [vmem:[%s1817_s8] ss:$0 sm:$0xff] }
 0x2dc   : > { %v1265_v1 = vpop.eup %1264 }
 0x2dd   : > { %v611_v3 = vadd.f32 1.0, %v1265_v1 }
 0x2df   : > { %v612_v4 = vmul.f32 %v611_v3, %v608_v2 }
 0x2e1   : > { %v1717_v5 = vadd.f32 %v612_v4, %v1683_v26 }
 0x2e3   : > { %631 = vadd.xlane.f32.xlu1 %v1717_v5  ;;  %v634_v6 = vmul.f32 %v1717_v5, %v1717_v5 }
 0x2e7   : > { %635 = vadd.xlane.f32.xlu1 %v634_v6 }
 0x36c   : > { %v632_v26 = vpop.xlane.xlu1 %631 }
 0x36d   : > { %v633_v27 = vmul.f32 0.03125, %v632_v26 }
 0x36f   : > { %v638_v29 = vmul.f32 %v633_v27, %v633_v27  ;;  %v641_v34 = vsub.f32 %v1717_v5, %v633_v27 }
 0x370   : > { %v636_v28 = vpop.xlane.xlu1 %635 }
 0x371   : > { %v637_v30 = vmul.f32 0.03125, %v636_v28 }
 0x373   : > { %v639_v31 = vsub.f32 %v637_v30, %v638_v29 }
 0x375   : > { %v640_v32 = vmax.f32 %v639_v31, 0.0 }
 0x377   : > { %v642_v33 = vadd.f32 1e-05, %v640_v32 }
 0x379   : > { %1266 = vrsqrt.f32 %v642_v33 }
 0x386   : > { %v1267_v35 = vpop.eup %1266 }
 0x387   : > { %v644_v37 = vmul.f32 %v1267_v35, %v641_v34 }
 0x389   : > { %v650_v39 = vmul.f32 %v963_v36, %v644_v37 }
 0x38b   : > { %v656_v40 = vadd.f32 %v964_v38, %v650_v39 }
 0x38d   : > { %1142 = vmatmul.mubr.f32.vlgmr.msra.gmra.mxu0 %v656_v40 }
 0x44d   : > { %v728_v55 = vpop.f32.mrf.mxu0 }
 0x44e   : > { %v729_v56 = vadd.f32 %v965_v54, %v728_v55 }
 0x44f   : > { %v1143_v57 = vpop.f32.mrf.mxu0 }
 0x450   : > { %v733_v58 = vmul.f32 0.70710677, %v729_v56  ;;  %v732_v60 = vmul.f32 0.5, %v729_v56 }
 0x452   : > { %1268 = verf.f32 %v733_v58 }
 0x45f   : > { %v1269_v59 = vpop.eup %1268 }
 0x460   : > { %v735_v61 = vadd.f32 1.0, %v1269_v59 }
 0x462   : > { %v736_v62 = vmul.f32 %v735_v61, %v732_v60 }
 0x464   : > { %v737_v0 = vadd.f32 %v736_v62, %v1717_v5 }
 0x466   : > { %1177 = vmatmul.mubr.f32.vlgmr.msra.gmra.mxu1 %v737_v0 }
 0x526   : > { %v827_v1 = vpop.f32.mrf.mxu1 }
 0x527   : > { %v828_v2 = vadd.f32 %v966_v63, %v827_v1 }
 0x528   : > { %v1178_v3 = vpop.f32.mrf.mxu1 }
 0x529   : > { %831 = vst [vmem:[%s391_s25] sm:$0xff] %v828_v2 }
 0x52a   : > { %1389 = shalt.err (!%p1386_p9)
}
 0x52b   : > { %s1390_s18 = scalar_lea.hbm %s1772_s26, 128  ;;  %s1394_s29 = scalar_lea.hbm %s1818_s9, 256 }
 0x52c   : > { %p1391_p13 = scmp.ne.s32.totalorder %s1772_s26, %s1390_s18  ;;  %p1395_p11 = scmp.lt.s32.totalorder %s1772_s26, %s1818_s9 }
 0x52d   : > { %p1396_p1 = scmp.lt.s32.totalorder %s1394_s29, %s1390_s18 }
 0x52e   : > { %p1392_p8 = pnand %p1391_p13, %p1843_p6 }
 0x52f   : > { %p1397_p2 = por %p1396_p1, %p1395_p11 }
 0x530   : > { %p1393_p10 = pneg %p1392_p8 }
 0x532   : > { %p1398_p4 = pnand %p1397_p2, %p1393_p10 }
 0x534   : > { %1401 = shalt.err (!%p1398_p4)
}
 0x535   : > { %1193 = dma.vmem_to_hbm [thread:$0]  (%p1843_p6), %s847_s28, 128, %s1772_s26, %s833_s27  }
 0x536 PF: > { %s858_s19 = sand.u32 1, %s1436_s30   ;;  %p1844_p12 = scmp.ne.s32.totalorder %s1827_s16, 0 }
 0x537   : > { %p1845_p0 = scmp.ge.s32.totalorder %s1448_s12, 2  ;;  %s859_s25 = scalar_lea.sflag [#allocation4], %s858_s19 }
 0x539   : > { %p1210_p5 = pnand %p1845_p0, %p1844_p12 }
 0x53b   : > { %p1211_p3 = pneg %p1210_p5 }
 0x53d   : > { %1431 = dma.done.wait (%p1211_p3), %s859_s25, 128  }
 0x53e   : > { %1433 = vsyncadd (%p1211_p3), %s859_s25, 4294967168  ;;  %s1846_s20 = sld [smem:[#allocation15_spill]]  ;;  %p24_p7 = scmp.ge.s32.totalorder %s1589_s22, 4  }
 0x53f   : > { %s1847_s30 = smov %s1440_s10  ;;  %s1848_s10 = smov %s1444_s11 }
 0x540   : > { %s1850_s12 = smov %s1589_s22  ;;  %26 = sbr.rel (!%p24_p7) target bundleno = 11 (0xb), region = 114 }
 0x544   : > { %s1849_s11 = smov %s1846_s20 }
 0x545   :  { %864 = vsyncpa [#allocation3], 1 }
 0x546   :  { %866 = vsyncpa [#allocation3 + $0x1], 1 }
 0x547   :  { %867 = vsyncpa [#allocation6], 1 }
 0x548   :  { %868 = vsyncpa [#allocation9], 1 }
 0x549   :  { %869 = vsyncpa [#allocation4], 1 }
 0x54a   :  { %871 = vsyncpa [#allocation4 + $0x1], 1 }

</bundles_post_ra>
